<compile_context>
chip_gen: v6e
topology: v6e:2x2x1
jax: 0.10.0
libtpu: 0.0.40
codegen_flags: <defaults>
</compile_context>

<pallas_src>
import functools

import jax
import jax.numpy as jnp
from jax import lax
from jax.experimental import pallas as pl
from jax.experimental.pallas import tpu as pltpu

_LANE = 128
_SUBLANE = 8
# Rows per input block: 2048 * 128 * 4 B = 1 MiB per f32 input block.
# 2 inputs x 2 pipeline buffers = 4 MiB, plus a few MiB of f32 temporaries
# -> comfortable on v5e/v6e (128 MiB) and v7x (64 MiB/TC) scoped VMEM.
_MAX_TS = 2048
# Pad logit: exp(-|pad|) == 0 and sigmoid(pad) == 0 exactly in f32, and the
# value is representable in f16/bf16 inputs (unlike -1e9 for f16).
_PAD_LOGIT = -1e4


def _cdiv(a, b):
    return (a + b - 1) // b


def _bce_dice_partial_kernel(p_ref, t_ref, o_ref, *, rs, ts, n_arb, n_rows,
                             needs_mask):
    """Accumulates lane-parallel partial sums for one (1, TS, 128) tile.

    o_ref block is (1, 4, 8, 128), resident across the innermost (reduction)
    grid axis:
      [0]: elementwise BCE-with-logits partials
      [1]: sigmoid(pred) * target partials  (intersection)
      [2]: sigmoid(pred) partials
      [3]: target partials
    The final (8,128)->scalar reduce and the tiny dice / mean / weighted
    combine happen in the JAX glue.
    """
    a = pl.program_id(2)

    @pl.when(a == 0)
    def _():
        o_ref[...] = jnp.zeros_like(o_ref)

    x = p_ref[0].astype(jnp.float32)   # (TS, 128) logits
    t = t_ref[0].astype(jnp.float32)   # (TS, 128) targets

    if needs_mask:
        # Ragged last tile / duplicated tile slot: rows at or beyond n_rows
        # hold unspecified data -- force them to the zero-contributing pad
        # values.  Only traced when raggedness can actually occur.
        k_global = pl.program_id(1) * n_arb + a
        valid = n_rows - k_global * ts
        row = lax.broadcasted_iota(jnp.int32, (ts, _LANE), 0)
        keep = row < valid
        x = jnp.where(keep, x, _PAD_LOGIT)
        t = jnp.where(keep, t, 0.0)

    # softplus(x) is shared by the stable BCE-with-logits and the sigmoid:
    #   bce     = softplus(x) - x * t
    #   sigmoid = exp(x - softplus(x))   (exact; no divide / select chain)
    # 3 EUP ops per element (exp, log1p, exp); VPU work is minimal.
    e = jnp.exp(-jnp.abs(x))
    sp = jnp.maximum(x, 0.0) + jnp.log1p(e)
    bce = sp - x * t
    s = jnp.exp(x - sp)

    # Fold the TS axis into the (8, 128) accumulators with pure VPU adds
    # (the reshape splits the sublane axis on an (8,128)-aligned boundary,
    # so it is a layout no-op; no cross-lane reductions in the hot loop).
    o_ref[0, 0] += jnp.sum(bce.reshape(rs, _SUBLANE, _LANE), axis=0)
    o_ref[0, 1] += jnp.sum((s * t).reshape(rs, _SUBLANE, _LANE), axis=0)
    o_ref[0, 2] += jnp.sum(s.reshape(rs, _SUBLANE, _LANE), axis=0)
    o_ref[0, 3] += jnp.sum(t.reshape(rs, _SUBLANE, _LANE), axis=0)


@functools.partial(jax.jit, static_argnames=("bce_weight", "dice_weight",
                                             "smooth", "eps"))
def bce_dice_loss(preds, targets, *, bce_weight=0.5, dice_weight=0.5,
                  smooth=1.0, eps=1e-7):
    # Flatten to (B, D) exactly like preds.view(preds.size(0), -1).
    B = preds.shape[0]
    preds2 = preds.reshape(B, -1)
    targets2 = targets.reshape(B, -1)
    D = preds2.shape[1]

    # Lane-dense layout: (B, D) -> (B, n_rows, 128).  Only pad D to the next
    # multiple of 128 (min 8 rows so block heights are legal); row raggedness
    # beyond that is masked in-kernel instead of padded, so the whole-tensor
    # pad copy rarely fires and never pads more than 127 elements per row.
    n_rows = max(_cdiv(D, _LANE), _SUBLANE)
    d_pad = n_rows * _LANE
    if d_pad != D:
        pad = d_pad - D
        preds2 = jnp.pad(preds2, ((0, 0), (0, pad)),
                         constant_values=_PAD_LOGIT)
        targets2 = jnp.pad(targets2, ((0, 0), (0, pad)), constant_values=0)
    preds3 = preds2.reshape(B, n_rows, _LANE)
    targets3 = targets2.reshape(B, n_rows, _LANE)

    # Tile size: largest 8-aligned block <= min(_MAX_TS, n_rows), but for
    # small batch split the row axis so the grid has >= ~4 steps (pipeline
    # depth) and >= 2 tile slots (dual-TensorCore sharding on v7x).
    max_ts = max(_SUBLANE, min(_MAX_TS, (n_rows // _SUBLANE) * _SUBLANE))
    ts = max_ts
    if B < 4:
        for tt in (max(2, 4 // B), 2):
            ts_small = (n_rows // (tt * _SUBLANE)) * _SUBLANE
            if ts_small >= _SUBLANE:
                ts = min(max_ts, ts_small)
                break
    n_tiles = _cdiv(n_rows, ts)
    n_par = min(2, n_tiles)          # tile-slot axis (sharded across v7x TCs)
    n_arb = _cdiv(n_tiles, n_par)    # reduction axis (innermost)
    needs_mask = (n_rows % ts != 0) or (n_par * n_arb != n_tiles)

    if n_par * n_arb == n_tiles:
        def row_block(b, p, a):
            return (b, p * n_arb + a, 0)
    else:
        def row_block(b, p, a):
            # Duplicated trailing tile slot(s): clamp to a valid block index;
            # the kernel fully masks their contribution to zero.
            return (b, jnp.minimum(p * n_arb + a, n_tiles - 1), 0)

    kernel = functools.partial(
        _bce_dice_partial_kernel, rs=ts // _SUBLANE, ts=ts, n_arb=n_arb,
        n_rows=n_rows, needs_mask=needs_mask)

    n_elem = B * D
    cost = pl.CostEstimate(
        flops=10 * n_elem,
        transcendentals=3 * n_elem,
        bytes_accessed=n_elem * (preds3.dtype.itemsize
                                 + targets3.dtype.itemsize)
        + B * n_par * 4 * _SUBLANE * _LANE * 4)

    partials = pl.pallas_call(
        kernel,
        out_shape=jax.ShapeDtypeStruct((B * n_par, 4, _SUBLANE, _LANE),
                                       jnp.float32),
        grid_spec=pltpu.PrefetchScalarGridSpec(
            num_scalar_prefetch=0,
            grid=(B, n_par, n_arb),        # reduction axis last
            in_specs=[
                pl.BlockSpec((1, ts, _LANE), row_block),
                pl.BlockSpec((1, ts, _LANE), row_block),
            ],
            out_specs=pl.BlockSpec((1, 4, _SUBLANE, _LANE),
                                   lambda b, p, a: (b * n_par + p, 0, 0, 0)),
        ),
        compiler_params=pltpu.CompilerParams(
            dimension_semantics=("parallel", "parallel", "arbitrary"),
            vmem_limit_bytes=32 << 20),
        cost_estimate=cost,
    )(preds3, targets3)

    # Final tiny reductions + scalar math in plain JAX.
    # TODO(synk): for huge-B / tiny-D workloads, a batch-blocked tile
    # (multiple batch rows per block) would amortize per-step overhead better.
    sums = jnp.sum(partials.reshape(B, n_par, 4, _SUBLANE * _LANE),
                   axis=(1, 3))   # (B, 4)
    bce_row_sum = sums[:, 0]
    intersection = sums[:, 1]
    pred_sum = sums[:, 2]
    target_sum = sums[:, 3]

    # BCEWithLogitsLoss default reduction='mean' over ALL (unpadded) elements.
    bce_loss = jnp.sum(bce_row_sum) / (B * D)

    union = pred_sum + target_sum
    soft_dice = 1.0 - (2.0 * intersection + smooth) / (union + smooth + eps)
    soft_dice_loss = jnp.mean(soft_dice)

    combined = bce_weight * bce_loss + dice_weight * soft_dice_loss
    return {"combined": combined, "bce": bce_loss, "soft_dice": soft_dice_loss}


def _reference(preds, targets, bce_weight=0.5, dice_weight=0.5,
               smooth=1.0, eps=1e-7):
    """Pure-JAX reference for sanity checking."""
    B = preds.shape[0]
    p = preds.reshape(B, -1).astype(jnp.float32)
    t = targets.reshape(B, -1).astype(jnp.float32)
    bce = jnp.mean(jnp.maximum(p, 0.0) - p * t + jnp.log1p(jnp.exp(-jnp.abs(p))))
    s = jax.nn.sigmoid(p)
    inter = jnp.sum(s * t, axis=1)
    union = jnp.sum(s, axis=1) + jnp.sum(t, axis=1)
    dice = jnp.mean(1.0 - (2.0 * inter + smooth) / (union + smooth + eps))
    return {"combined": bce_weight * bce + dice_weight * dice,
            "bce": bce, "soft_dice": dice}


if __name__ == "__main__":
    key = jax.random.PRNGKey(0)
    k1, k2, k3, k4 = jax.random.split(key, 4)

    # NCHW: batch=2, channels=4, spatial=16x16 (lane-aligned: no pad, no mask)
    preds = jax.random.normal(k1, (2, 4, 16, 16), dtype=jnp.float32)
    targets = (jax.random.uniform(k2, (2, 4, 16, 16)) > 0.5).astype(jnp.float32)
    out = bce_dice_loss(preds, targets)
    jax.block_until_ready(out)
    ref = _reference(preds, targets)
    for name in ("combined", "bce", "soft_dice"):
        assert jnp.allclose(out[name], ref[name], rtol=1e-5, atol=1e-5), (
            name, out[name], ref[name])

    # batch=1 with a tile count that does not split evenly across the two
    # tile slots: exercises ragged-tile masking, duplicated-slot clamping,
    # and the (B, n_par, n_arb) grid.
    preds_b = jax.random.normal(k3, (1, 5, 32, 32), dtype=jnp.float32)
    targets_b = (jax.random.uniform(k4, (1, 5, 32, 32)) > 0.5).astype(jnp.float32)
    out_b = bce_dice_loss(preds_b, targets_b)
    jax.block_until_ready(out_b)
    ref_b = _reference(preds_b, targets_b)
    for name in ("combined", "bce", "soft_dice"):
        assert jnp.allclose(out_b[name], ref_b[name], rtol=1e-5, atol=1e-5), (
            name, out_b[name], ref_b[name])

    print("KERNEL_OK")
</pallas_src>

<mosaic_0001>
module attributes {stable_mosaic.version = 11 : i64} {
  func.func @_bce_dice_partial_kernel(%arg0: i32, %arg1: i32, %arg2: i32, %arg3: memref<1x8x128xf32, #tpu.memory_space<vmem>>, %arg4: memref<1x8x128xf32, #tpu.memory_space<vmem>>, %arg5: memref<1x4x8x128xf32, #tpu.memory_space<vmem>>) attributes {dimension_semantics = [#tpu.dimension_semantics<parallel>, #tpu.dimension_semantics<parallel>, #tpu.dimension_semantics<arbitrary>], iteration_bounds = array<i64: 2, 1, 1>, scalar_prefetch = 0 : i64, scratch_operands = 0 : i64, tpu.core_type = #tpu.core_type<tc>, window_params = [{transform_indices = @transform_0, window_bounds = array<i64: 1, 8, 128>}, {transform_indices = @transform_1, window_bounds = array<i64: 1, 8, 128>}, {transform_indices = @transform_2, window_bounds = array<i64: 1, 4, 8, 128>}]} {
    %c0_i32 = arith.constant 0 : i32
    %0 = arith.cmpi eq, %arg2, %c0_i32 : i32
    %1 = arith.extui %0 : i1 to i32
    %c0_i32_0 = arith.constant 0 : i32
    %2 = arith.cmpi ne, %1, %c0_i32_0 : i32
    scf.if %2 {
      %cst_40 = arith.constant 0.000000e+00 : f32
      %52 = vector.broadcast %cst_40 : f32 to vector<1x4x8x128xf32>
      %c0_41 = arith.constant 0 : index
      %c0_42 = arith.constant 0 : index
      %c0_43 = arith.constant 0 : index
      %c0_44 = arith.constant 0 : index
      %53 = vector.load %arg5[%c0_41, %c0_42, %c0_43, %c0_44] : memref<1x4x8x128xf32, #tpu.memory_space<vmem>>, vector<1x4x8x128xf32>
      tpu.vector_store %arg5[%c0_41, %c0_42, %c0_43, %c0_44], %52 {strides = array<i32>} : memref<1x4x8x128xf32, #tpu.memory_space<vmem>>, vector<1x4x8x128xf32>,
    } else {
    }
    %c0 = arith.constant 0 : index
    %c0_1 = arith.constant 0 : index
    %c0_2 = arith.constant 0 : index
    %3 = vector.load %arg3[%c0, %c0_1, %c0_2] : memref<1x8x128xf32, #tpu.memory_space<vmem>>, vector<1x8x128xf32>
    %4 = vector.shape_cast %3 : vector<1x8x128xf32> to vector<8x128xf32>
    %c0_3 = arith.constant 0 : index
    %c0_4 = arith.constant 0 : index
    %c0_5 = arith.constant 0 : index
    %5 = vector.load %arg4[%c0_3, %c0_4, %c0_5] : memref<1x8x128xf32, #tpu.memory_space<vmem>>, vector<1x8x128xf32>
    %6 = vector.shape_cast %5 : vector<1x8x128xf32> to vector<8x128xf32>
    %7 = math.absf %4 : vector<8x128xf32>
    %cst = arith.constant 0.000000e+00 : f32
    %8 = vector.broadcast %cst : f32 to vector<8x128xf32>
    %9 = arith.subf %8, %7 : vector<8x128xf32>
    %10 = math.exp %9 : vector<8x128xf32>
    %cst_6 = arith.constant 0.000000e+00 : f32
    %11 = vector.broadcast %cst_6 : f32 to vector<8x128xf32>
    %12 = arith.maximumf %4, %11 : vector<8x128xf32>
    %13 = math.log1p %10 : vector<8x128xf32>
    %14 = arith.addf %12, %13 : vector<8x128xf32>
    %15 = arith.mulf %4, %6 : vector<8x128xf32>
    %16 = arith.subf %14, %15 : vector<8x128xf32>
    %17 = arith.subf %4, %14 : vector<8x128xf32>
    %18 = math.exp %17 : vector<8x128xf32>
    %c0_7 = arith.constant 0 : index
    %c0_8 = arith.constant 0 : index
    %c0_9 = arith.constant 0 : index
    %c0_10 = arith.constant 0 : index
    %19 = vector.load %arg5[%c0_7, %c0_8, %c0_9, %c0_10] : memref<1x4x8x128xf32, #tpu.memory_space<vmem>>, vector<1x1x8x128xf32>
    %20 = vector.shape_cast %19 : vector<1x1x8x128xf32> to vector<8x128xf32>
    %21 = vector.shape_cast %16 : vector<8x128xf32> to vector<1x8x128xf32>
    %cst_11 = arith.constant dense<0.000000e+00> : vector<8x128xf32>
    %22 = vector.multi_reduction <add>, %21, %cst_11 [0] : vector<1x8x128xf32> to vector<8x128xf32>
    %23 = arith.addf %20, %22 : vector<8x128xf32>
    %c0_12 = arith.constant 0 : index
    %c0_13 = arith.constant 0 : index
    %c0_14 = arith.constant 0 : index
    %c0_15 = arith.constant 0 : index
    %24 = vector.load %arg5[%c0_12, %c0_13, %c0_14, %c0_15] : memref<1x4x8x128xf32, #tpu.memory_space<vmem>>, vector<1x1x8x128xf32>
    %25 = vector.shape_cast %24 : vector<1x1x8x128xf32> to vector<8x128xf32>
    %26 = vector.shape_cast %23 : vector<8x128xf32> to vector<1x1x8x128xf32>
    tpu.vector_store %arg5[%c0_12, %c0_13, %c0_14, %c0_15], %26 {strides = array<i32>} : memref<1x4x8x128xf32, #tpu.memory_space<vmem>>, vector<1x1x8x128xf32>,
    %c0_16 = arith.constant 0 : index
    %c1 = arith.constant 1 : index
    %c0_17 = arith.constant 0 : index
    %c0_18 = arith.constant 0 : index
    %27 = vector.load %arg5[%c0_16, %c1, %c0_17, %c0_18] : memref<1x4x8x128xf32, #tpu.memory_space<vmem>>, vector<1x1x8x128xf32>
    %28 = vector.shape_cast %27 : vector<1x1x8x128xf32> to vector<8x128xf32>
    %29 = arith.mulf %18, %6 : vector<8x128xf32>
    %30 = vector.shape_cast %29 : vector<8x128xf32> to vector<1x8x128xf32>
    %cst_19 = arith.constant dense<0.000000e+00> : vector<8x128xf32>
    %31 = vector.multi_reduction <add>, %30, %cst_19 [0] : vector<1x8x128xf32> to vector<8x128xf32>
    %32 = arith.addf %28, %31 : vector<8x128xf32>
    %c0_20 = arith.constant 0 : index
    %c1_21 = arith.constant 1 : index
    %c0_22 = arith.constant 0 : index
    %c0_23 = arith.constant 0 : index
    %33 = vector.load %arg5[%c0_20, %c1_21, %c0_22, %c0_23] : memref<1x4x8x128xf32, #tpu.memory_space<vmem>>, vector<1x1x8x128xf32>
    %34 = vector.shape_cast %33 : vector<1x1x8x128xf32> to vector<8x128xf32>
    %35 = vector.shape_cast %32 : vector<8x128xf32> to vector<1x1x8x128xf32>
    tpu.vector_store %arg5[%c0_20, %c1_21, %c0_22, %c0_23], %35 {strides = array<i32>} : memref<1x4x8x128xf32, #tpu.memory_space<vmem>>, vector<1x1x8x128xf32>,
    %c0_24 = arith.constant 0 : index
    %c2 = arith.constant 2 : index
    %c0_25 = arith.constant 0 : index
    %c0_26 = arith.constant 0 : index
    %36 = vector.load %arg5[%c0_24, %c2, %c0_25, %c0_26] : memref<1x4x8x128xf32, #tpu.memory_space<vmem>>, vector<1x1x8x128xf32>
    %37 = vector.shape_cast %36 : vector<1x1x8x128xf32> to vector<8x128xf32>
    %38 = vector.shape_cast %18 : vector<8x128xf32> to vector<1x8x128xf32>
    %cst_27 = arith.constant dense<0.000000e+00> : vector<8x128xf32>
    %39 = vector.multi_reduction <add>, %38, %cst_27 [0] : vector<1x8x128xf32> to vector<8x128xf32>
    %40 = arith.addf %37, %39 : vector<8x128xf32>
    %c0_28 = arith.constant 0 : index
    %c2_29 = arith.constant 2 : index
    %c0_30 = arith.constant 0 : index
    %c0_31 = arith.constant 0 : index
    %41 = vector.load %arg5[%c0_28, %c2_29, %c0_30, %c0_31] : memref<1x4x8x128xf32, #tpu.memory_space<vmem>>, vector<1x1x8x128xf32>
    %42 = vector.shape_cast %41 : vector<1x1x8x128xf32> to vector<8x128xf32>
    %43 = vector.shape_cast %40 : vector<8x128xf32> to vector<1x1x8x128xf32>
    tpu.vector_store %arg5[%c0_28, %c2_29, %c0_30, %c0_31], %43 {strides = array<i32>} : memref<1x4x8x128xf32, #tpu.memory_space<vmem>>, vector<1x1x8x128xf32>,
    %c0_32 = arith.constant 0 : index
    %c3 = arith.constant 3 : index
    %c0_33 = arith.constant 0 : index
    %c0_34 = arith.constant 0 : index
    %44 = vector.load %arg5[%c0_32, %c3, %c0_33, %c0_34] : memref<1x4x8x128xf32, #tpu.memory_space<vmem>>, vector<1x1x8x128xf32>
    %45 = vector.shape_cast %44 : vector<1x1x8x128xf32> to vector<8x128xf32>
    %46 = vector.shape_cast %6 : vector<8x128xf32> to vector<1x8x128xf32>
    %cst_35 = arith.constant dense<0.000000e+00> : vector<8x128xf32>
    %47 = vector.multi_reduction <add>, %46, %cst_35 [0] : vector<1x8x128xf32> to vector<8x128xf32>
    %48 = arith.addf %45, %47 : vector<8x128xf32>
    %c0_36 = arith.constant 0 : index
    %c3_37 = arith.constant 3 : index
    %c0_38 = arith.constant 0 : index
    %c0_39 = arith.constant 0 : index
    %49 = vector.load %arg5[%c0_36, %c3_37, %c0_38, %c0_39] : memref<1x4x8x128xf32, #tpu.memory_space<vmem>>, vector<1x1x8x128xf32>
    %50 = vector.shape_cast %49 : vector<1x1x8x128xf32> to vector<8x128xf32>
    %51 = vector.shape_cast %48 : vector<8x128xf32> to vector<1x1x8x128xf32>
    tpu.vector_store %arg5[%c0_36, %c3_37, %c0_38, %c0_39], %51 {strides = array<i32>} : memref<1x4x8x128xf32, #tpu.memory_space<vmem>>, vector<1x1x8x128xf32>,
    return
  }
  func.func @transform_0(%arg0: i32, %arg1: i32, %arg2: i32) -> (i32, i32, i32) {
    %c1_i32 = arith.constant 1 : i32
    %0 = arith.muli %arg1, %c1_i32 : i32
    %1 = arith.addi %0, %arg2 : i32
    %c0_i32 = arith.constant 0 : i32
    %c0_i32_0 = arith.constant 0 : i32
    return %arg0, %1, %c0_i32 : i32, i32, i32
  }
  func.func @transform_1(%arg0: i32, %arg1: i32, %arg2: i32) -> (i32, i32, i32) {
    %c1_i32 = arith.constant 1 : i32
    %0 = arith.muli %arg1, %c1_i32 : i32
    %1 = arith.addi %0, %arg2 : i32
    %c0_i32 = arith.constant 0 : i32
    %c0_i32_0 = arith.constant 0 : i32
    return %arg0, %1, %c0_i32 : i32, i32, i32
  }
  func.func @transform_2(%arg0: i32, %arg1: i32, %arg2: i32) -> (i32, i32, i32, i32) {
    %c1_i32 = arith.constant 1 : i32
    %0 = arith.muli %arg0, %c1_i32 : i32
    %1 = arith.addi %0, %arg1 : i32
    %c0_i32 = arith.constant 0 : i32
    %c0_i32_0 = arith.constant 0 : i32
    %c0_i32_1 = arith.constant 0 : i32
    %c0_i32_2 = arith.constant 0 : i32
    return %1, %c0_i32, %c0_i32_0, %c0_i32_1 : i32, i32, i32, i32
  }
}

</mosaic_0001>

<bundles_post_ra>
// kernel: bce_dice_loss.1
= control target key start
LH: loop header
LB: loop body
LE: loop exit
PB: predicated region body
PF: predicated region fallthrough
CT: control target
= control target key end

     0   :  { %s444_s9 = smov 0   ;;  %s446_s10 = smov 0   ;;  %s480_s0 = inlined_call_operand.vmem [shape: f32[2,8,128], index: 0, kind: input, shape index: {}]   ;;  %s481_s1 = inlined_call_operand.vmem [shape: f32[2,8,128], index: 1, kind: input, shape index: {}]   ;;  %s482_s2 = inlined_call_operand.vmem [shape: f32[2,4,8,128], index: 2, kind: output, shape index: {}]  }
   0x1   :  { %s448_s11 = smov 0  }
   0x2 LB: > { %s31_s12 = sadd.s32 1, %s423_s10  ;;  %p360_p0 = scmp.ge.s32.totalorder %s427_s11, 1  ;;  %s427_s11 = sphi %s448_s11, %s12_s11   ;;  %s423_s10 = sphi %s446_s10, %s484_s10   ;;  %s419_s9 = sphi %s444_s9, %s483_s9  }
   0x3   : > { %p33_p1 = scmp.ge.s32.totalorder %s31_s12, 2  ;;  %p159_p2 = scmp.lt.s32.totalorder %s427_s11, 3 }
   0x5   : > { %s486_s12 = smov (%p33_p1, %s31_s12), 0  ;;  %p160_p3 = pnand %p360_p0, %p159_p2 }
   0x6   : > { %p194_p4 = scmp.lt.s32.totalorder (!%p160_p3), %s419_s9, 1 }
   0x7   : > { %163 = sbr.rel (%p160_p3) target bundleno = 78 (0x4e), region = 28 }
   0xc   : > { %s488_s9 = smov (!%p194_p4, %s419_s9), 1 }
   0xd   : > { %s373_s13 = sshll.u32 %s488_s9, 5  ;;  %s361_s14 = sshll.u32 %s488_s9, 3 }
   0xe   : > { %s200_s17 = scalar_lea.vmem %s480_s0, %s361_s14  ;;  %s209_s20 = scalar_lea.vmem %s481_s1, %s361_s14 }
   0xf   : > { %v226_v0 = vld [vmem:[%s200_s17] sm:$0xff]  ;;  %s216_s23 = scalar_lea.vmem %s482_s2, %s373_s13 }
  0x10   : > { %v227_v1 = vld [vmem:[%s209_s20] sm:$0xff]  ;;  %v228_v2 = vand.u32 2147483647, %v226_v0  ;;  %v232_v12 = vmax.f32 %v226_v0, 0.0 }
  0x11   : > { %370 = vst [vmem:[%s216_s23 + $0x18] sm:$0xff] %v227_v1  ;;  %v243_v14 = vmul.f32 %v227_v1, %v226_v0 }
  0x12   : > { %v229_v3 = vsub.f32 0.0, %v228_v2 }
  0x14   : > { %v230_v4 = vmul.f32 1.442695, %v229_v3 }
  0x16   : > { %399 = vpow2.f32 %v230_v4 }
  0x23   : > { %v400_v5 = vpop.eup %399 }
  0x24   : > { %v233_v6 = vadd.f32 1.0, %v400_v5  ;;  %v236_v7 = vmul.f32 -0.5, %v400_v5  ;;  %v239_v9 = vand.u32 2147483647, %v400_v5 }
  0x26   : > { %401 = vlog2.f32 %v233_v6  ;;  %v237_v8 = vadd.f32 1.0, %v236_v7  ;;  %vm240_vm0 = vcmp.lt.f32.partialorder %v239_v9, 0.0004427343 }
  0x28   : > { %v238_v10 = vmul.f32 %v400_v5, %v237_v8 }
  0x33   : > { %v402_v11 = vpop.eup %401 }
  0x34   : > { %v235_v13 = vmul.f32 0.6931472, %v402_v11 }
  0x36   : > { %v241_v15 = vsel %vm240_vm0, %v238_v10, %v235_v13 }
  0x37   : > { %v242_v16 = vadd.f32 %v241_v15, %v232_v12 }
  0x39   : > { %v244_v17 = vsub.f32 %v242_v16, %v243_v14  ;;  %v245_v18 = vsub.f32 %v226_v0, %v242_v16 }
  0x3b   : > { %v246_v19 = vmul.f32 1.442695, %v245_v18  ;;  %251 = vst [vmem:[%s216_s23] sm:$0xff] %v244_v17 }
  0x3d   : > { %403 = vpow2.f32 %v246_v19 }
  0x4a   : > { %v404_v20 = vpop.eup %403 }
  0x4b   : > { %v254_v21 = vmul.f32 %v404_v20, %v227_v1  ;;  %368 = vst [vmem:[%s216_s23 + $0x10] sm:$0xff] %v404_v20 }
  0x4d   : > { %366 = vst [vmem:[%s216_s23 + $0x8] sm:$0xff] %v254_v21 }
  0x4e PF: > { %s12_s11 = sadd.s32 1, %s427_s11   ;;  %s483_s9 = smov %s423_s10 }
  0x4f   : > { %p9_p5 = scmp.ge.s32.totalorder %s12_s11, 4   ;;  %s484_s10 = smov %s486_s12 }
  0x51   :  { %11 = sbr.rel (!%p9_p5) target bundleno = 2 (0x2), region = 68 }

</bundles_post_ra>
